<compile_context>
chip_gen: v7x
topology: tpu7x:2x2x1
jax: 0.10.0
libtpu: 0.0.40
codegen_flags: <defaults>
</compile_context>

<pallas_src>
import jax
import jax.numpy as jnp
from jax.experimental import pallas as pl
from jax.experimental.pallas import tpu as pltpu


def _ceemdan_fused_kernel(x_ref, w_ref, b_ref, out_ref):
    """Single fused affine map for all 3 sub-models + sum + concat.

    x_ref  : (B, 3*input_dim)        f32 VMEM (row-major flatten of x)
    w_ref  : (3*input_dim, N_pad)    bf16 VMEM (per-model fused W1@W2, row-
                                     permuted to match the raw x flatten,
                                     sum+concat folded into column blocks,
                                     columns zero-padded to 128 lanes)
    b_ref  : (1, N_pad)              f32 VMEM (fused bias, padded)
    out_ref: (B, N_pad)              f32; cols [0:4*out_dim] = [o0+o1+o2,o0,o1,o2]
    """
    x_bf16 = x_ref[...].astype(jnp.bfloat16)            # cast in-kernel (VPU)
    y = jnp.dot(x_bf16, w_ref[...],
                preferred_element_type=jnp.float32) + b_ref[...]
    out_ref[...] = y.astype(out_ref.dtype)


def ceemdan_nn_forward(x, packed):
    """x: (B, S, 3*feature_num) float32.  packed: dict from pack_params().

    Returns (B, 1, out_dim*4) == torch.cat([o0+o1+o2, o0, o1, o2], dim=-1).
    """
    B, S, C = x.shape
    k_dim = S * C                         # = 3 * input_dim
    n_pad = packed["w_fused"].shape[-1]   # 128 (lane-padded)
    n_out = packed["n_out"]               # 4 * out_dim (valid columns)

    # Row-major contiguous flatten — pure view, no data rearrangement in HBM.
    x_flat = x.reshape(B, k_dim)

    vmem_spec = pl.BlockSpec(memory_space=pltpu.MemorySpace.VMEM)
    out = pl.pallas_call(
        _ceemdan_fused_kernel,
        out_shape=jax.ShapeDtypeStruct((B, n_pad), jnp.float32),
        in_specs=[vmem_spec] * 3,
        out_specs=vmem_spec,
    )(x_flat, packed["w_fused"], packed["b_fused"])

    # Slice off the lane padding; dim=1 is pred_len.
    return out[:, None, :n_out]           # (B, 1, out_dim*4)


def init_params(key, input_dim, hidden_dim, output_dim, n_models=3):
    """Per-model weights mimicking nn.Linear's U(-1/sqrt(fan_in), ...).

    Stored pre-transposed (in, out) so y = x @ W + b.
    (Dropout in the PyTorch module is never applied in forward — no-op.)
    """
    k1, k2, k3, k4 = jax.random.split(key, 4)
    lim1 = 1.0 / jnp.sqrt(jnp.float32(input_dim))
    lim2 = 1.0 / jnp.sqrt(jnp.float32(hidden_dim))
    return {
        "w1": jax.random.uniform(k1, (n_models, input_dim, hidden_dim),
                                 jnp.float32, -lim1, lim1),
        "b1": jax.random.uniform(k2, (n_models, 1, hidden_dim),
                                 jnp.float32, -lim1, lim1),
        "w2": jax.random.uniform(k3, (n_models, hidden_dim, output_dim),
                                 jnp.float32, -lim2, lim2),
        "b2": jax.random.uniform(k4, (n_models, 1, output_dim),
                                 jnp.float32, -lim2, lim2),
    }


def pack_params(params, seq_len, feature_num, lane=128):
    """One-time weight preprocessing.

    Because there is no nonlinearity between encoder and decoder, each
    sub-model is one affine map:
        Wf_i = w1_i @ w2_i            (input_dim, out_dim)
        bf_i = b1_i @ w2_i + b2_i     (1, out_dim)

    These are packed into a single matrix W_fused (3*input_dim, N_pad):
      - rows are permuted so x.reshape(B, S*3F) @ W_fused is directly valid
        (row s*3F + i*F + f holds Wf_i's row s*F + f),
      - column block 0 accumulates the o0+o1+o2 sum, blocks 1..3 the per-model
        outputs (the concat costs nothing),
      - columns are zero-padded to a multiple of 128 lanes,
      - stored bf16 (the bias stays f32 and is added after the f32 accumulate).
    """
    n, input_dim, H = params["w1"].shape
    out_dim = params["w2"].shape[-1]
    S, F = seq_len, feature_num
    assert input_dim == S * F

    n_out = 4 * out_dim
    n_pad = ((n_out + lane - 1) // lane) * lane

    # Per-model fused affine maps (f32 math, cast at the end).
    wf = jnp.einsum("nik,nko->nio", params["w1"], params["w2"])          # (3, in, O)
    bf = (jnp.einsum("nik,nko->nio", params["b1"], params["w2"])
          + params["b2"]).reshape(n, out_dim)                            # (3, O)

    wf_r = wf.reshape(n, S, F, out_dim)                                  # (3, S, F, O)

    # [s, i, f, col] layout -> reshape to (S*3F, n_pad) matches the x flatten.
    w_big = jnp.zeros((S, n, F, n_pad), jnp.float32)
    for i in range(n):
        w_big = w_big.at[:, i, :, 0:out_dim].set(wf_r[i])                    # sum block
        w_big = w_big.at[:, i, :, (i + 1) * out_dim:(i + 2) * out_dim].set(
            wf_r[i])                                                         # model block
    w_big = w_big.reshape(S * n * F, n_pad)

    b_big = jnp.zeros((1, n_pad), jnp.float32)
    b_big = b_big.at[0, 0:out_dim].set(bf.sum(0))
    for i in range(n):
        b_big = b_big.at[0, (i + 1) * out_dim:(i + 2) * out_dim].set(bf[i])

    return {"w_fused": w_big.astype(jnp.bfloat16),
            "b_fused": b_big,          # f32, added after the f32 accumulate
            "n_out": n_out}


def _reference(x, params):
    """Pure-JAX f32 reference identical to the PyTorch forward semantics."""
    B, S, C = x.shape
    f = C // 3
    outs = []
    for i in range(3):
        xi = x[:, :, i * f:(i + 1) * f].reshape(B, -1)
        h = xi @ params["w1"][i] + params["b1"][i]
        y = h @ params["w2"][i] + params["b2"][i]
        outs.append(y)
    cat = jnp.concatenate([outs[0] + outs[1] + outs[2]] + outs, axis=-1)
    return cat[:, None, :]


if __name__ == "__main__":
    # Small shapes consistent with the module:
    #   batch=2, seq_len=8, feature_num=4  -> x: (2, 8, 12)
    #   NN input_dim = seq_len * feature_num = 32, hidden=32, output_dim=8
    B, S, F = 2, 8, 4
    input_dim, hidden_dim, output_dim = S * F, 32, 8

    key = jax.random.PRNGKey(0)
    kx, kp = jax.random.split(key)
    x = jax.random.normal(kx, (B, S, F * 3), dtype=jnp.float32)
    params = init_params(kp, input_dim, hidden_dim, output_dim)
    packed = pack_params(params, S, F)      # one-time weight preprocessing

    out = ceemdan_nn_forward(x, packed)
    out = jax.block_until_ready(out)

    assert out.shape == (B, 1, output_dim * 4), out.shape

    # bf16 MXU inputs -> widened tolerance vs. the f32 reference (review note).
    ref = _reference(x, params)
    assert jnp.allclose(out, ref, atol=3e-2, rtol=3e-2), "mismatch vs reference"

    print("KERNEL_OK")
</pallas_src>

<mosaic_0001>
module attributes {stable_mosaic.version = 11 : i64} {
  func.func @_ceemdan_fused_kernel(%arg0: memref<2x96xf32, #tpu.memory_space<vmem>>, %arg1: memref<96x128xbf16, #tpu.memory_space<vmem>>, %arg2: memref<1x128xf32, #tpu.memory_space<vmem>>, %arg3: memref<2x128xf32, #tpu.memory_space<vmem>>) attributes {dimension_semantics = [], scalar_prefetch = 0 : i64, scratch_operands = 0 : i64, tpu.core_type = #tpu.core_type<tc>} {
    %c0 = arith.constant 0 : index
    %c0_0 = arith.constant 0 : index
    %0 = vector.load %arg0[%c0, %c0_0] : memref<2x96xf32, #tpu.memory_space<vmem>>, vector<2x96xf32>
    %1 = arith.truncf %0 : vector<2x96xf32> to vector<2x96xbf16>
    %c0_1 = arith.constant 0 : index
    %c0_2 = arith.constant 0 : index
    %2 = vector.load %arg1[%c0_1, %c0_2] : memref<96x128xbf16, #tpu.memory_space<vmem>>, vector<96x128xbf16>
    %cst = arith.constant dense<0.000000e+00> : vector<2x128xf32>
    %3 = tpu.matmul %1, %2, %cst {dimension_numbers = #tpu.dot_dimension_numbers<[1], [0], [0], [1], [0, 0, 1, 1], [], []>} : vector<2x96xbf16>, vector<96x128xbf16>, vector<2x128xf32> -> vector<2x128xf32>
    %c0_3 = arith.constant 0 : index
    %c0_4 = arith.constant 0 : index
    %4 = vector.load %arg2[%c0_3, %c0_4] : memref<1x128xf32, #tpu.memory_space<vmem>>, vector<1x128xf32>
    %5 = vector.broadcast %4 : vector<1x128xf32> to vector<2x128xf32>
    %6 = arith.addf %3, %5 : vector<2x128xf32>
    %c0_5 = arith.constant 0 : index
    %c0_6 = arith.constant 0 : index
    %7 = vector.load %arg3[%c0_5, %c0_6] : memref<2x128xf32, #tpu.memory_space<vmem>>, vector<2x128xf32>
    tpu.vector_store %arg3[%c0_5, %c0_6], %6 {strides = array<i32>} : memref<2x128xf32, #tpu.memory_space<vmem>>, vector<2x128xf32>,
    return
  }
}

</mosaic_0001>

<bundles_post_ra>
// kernel: tpu_custom_call.1
= control target key start
LH: loop header
LB: loop body
LE: loop exit
PB: predicated region body
PF: predicated region fallthrough
CT: control target
= control target key end

     0   :  { %8 = vsyncpa [#allocation3], 0  ;;  %s349_s0 = inlined_call_operand.hbm [shape: f32[2,96], index: 0, kind: input, shape index: {}]   ;;  %s350_s1 = inlined_call_operand.hbm [shape: bf16[96,128], index: 1, kind: input, shape index: {}]   ;;  %s351_s2 = inlined_call_operand.vmem [shape: f32[1,128], index: 2, kind: input, shape index: {}]   ;;  %s352_s3 = inlined_call_operand.hbm [shape: f32[2,128], index: 3, kind: output, shape index: {}]  }
   0x1   :  { %9 = vsyncpa [#allocation6], 0 }
   0x2   :  { %10 = vsyncpa [#allocation4], 0  ;;  %s276_s12 = smov [#allocation2]   ;;  %s277_s14 = smov [#allocation5]  }
   0x3   :  { %s17_s13 = sshll.u32 %s276_s12, 4  ;;  %s26_s15 = sshll.u32 %s277_s14, 4  ;;  %s18_s13 = int_to_ptr.vmem [resolvable:$true] %s17_s13  ;;  %s303_s15 = int_to_ptr.vmem [resolvable:$true] %s26_s15 }
   0x4   :  { %s204_s18 = scalar_lea.hbm %s349_s0, 32 }
   0x5   :  { %p205_p0 = scmp.ne.s32.totalorder %s349_s0, %s204_s18  ;;  %p208_p1 = scmp.lt.u32.totalorder %s204_s18, %s349_s0 }
   0x7   :  { %p210_p2 = pnand %p208_p1, %p205_p0 }
   0x9   :  { %213 = shalt.err (!%p210_p2)
}
   0xa   :  { %s214_s23 = scalar_lea.vmem %s18_s13, 32  ;;  %p219_p4 = scmp.lt.s32.totalorder %s18_s13, %s18_s13 }
   0xb   :  { %p215_p3 = scmp.ne.s32.totalorder %s18_s13, %s214_s23  ;;  %p220_p5 = scmp.lt.s32.totalorder %s214_s23, %s214_s23 }
   0xd   :  { %p221_p6 = por %p220_p5, %p219_p4 }
   0xf   :  { %p222_p7 = pnand %p221_p6, %p215_p3 }
  0x11   :  { %225 = shalt.err (!%p222_p7)
}
  0x12   :  { %20 = dma.hbm_to_vmem [thread:$0]  %s349_s0, 32, %s18_s13, [#allocation3]  }
  0x13   :  { %s226_s28 = scalar_lea.hbm %s350_s1, 768 }
  0x14   :  { %p227_p8 = scmp.ne.s32.totalorder %s350_s1, %s226_s28  ;;  %p230_p9 = scmp.lt.u32.totalorder %s226_s28, %s350_s1 }
  0x16   :  { %p232_p10 = pnand %p230_p9, %p227_p8 }
  0x18   :  { %235 = shalt.err (!%p232_p10)
}
  0x19   :  { %s236_s6 = scalar_lea.vmem %s303_s15, 768  ;;  %p241_p12 = scmp.lt.s32.totalorder %s303_s15, %s303_s15 }
  0x1a   :  { %p237_p11 = scmp.ne.s32.totalorder %s303_s15, %s236_s6  ;;  %p242_p13 = scmp.lt.s32.totalorder %s236_s6, %s236_s6 }
  0x1c   :  { %p243_p0 = por %p242_p13, %p241_p12 }
  0x1e   :  { %p244_p1 = pnand %p243_p0, %p237_p11 }
  0x20   :  { %247 = shalt.err (!%p244_p1)
}
  0x21   :  { %s278_s0 = smov 64   ;;  %s279_s7 = smov 4  }
  0x22   :  { %32 = dma.hbm_to_vmem [thread:$0]  %s350_s1, 768, %s303_s15, [#allocation6], %s278_s0, %s278_s0, %s279_s7  }
  0x23   :  { %270 = dma.done.wait [#allocation3], 32  }
  0x24   :  { %271 = vsyncadd [#allocation3], 4294967264 }
  0x25   :  { %272 = dma.done.wait [#allocation6], 768  }
  0x26   :  { %273 = vsyncadd [#allocation6], 4294966528  ;;  %v280_v0 = vmov 0.0   ;;  %vm281_vm0 = vmmov 0   ;;  %v198_v1 = vld [vmem:[#allocation5] sm:$0xff]   ;;  %v199_v2 = vld [vmem:[#allocation5 + $0x8] sm:$0xff]  }
  0x27   :  { %175 = vmatprep.subr.bf16.mxu0 %v280_v0  ;;  %187 = vmatprep.mubr.msk.bf16.mxu0 %vm281_vm0, %v280_v0  ;;  %v200_v3 = vld [vmem:[#allocation5 + $0x10] sm:$0xff]   ;;  %v201_v4 = vld [vmem:[#allocation5 + $0x18] sm:$0xff]   ;;  %v202_v5 = vld [vmem:[#allocation5 + $0x20] sm:$0xff]   ;;  %vm99_vm1 = vcmask 785408   ;;  %s282_s11 = smov [#allocation7]  }
  0x28   :  { %176 = vmatpush3.bf16.msra.mxu0 %v198_v1  ;;  %v203_v6 = vld [vmem:[#allocation5 + $0x28] sm:$0xff]   ;;  %v42_v7 = vld [vmem:[#allocation2] sm:$0x3]  ;;  %s150_s12 = sshll.u32 %s282_s11, 4  ;;  %s151_s12 = int_to_ptr.vmem [resolvable:$true] %s150_s12 }
  0x29   :  { %177 = vmatprep.subr.bf16.mxu0 %v280_v0  ;;  %v43_v8 = vpack.c.bf16 %v42_v7, %v42_v7  ;;  %v160_v9 = vld [vmem:[%s351_s2] ss:$0 sm:$0xff]  ;;  %s248_s13 = scalar_lea.vmem %s151_s12, 32  ;;  %p253_p3 = scmp.lt.s32.totalorder %s151_s12, %s151_s12 }
  0x2a   :  { %p249_p2 = scmp.ne.s32.totalorder %s151_s12, %s248_s13  ;;  %p254_p4 = scmp.lt.s32.totalorder %s248_s13, %s248_s13 }
  0x2c   :  { %178 = vmatpush3.bf16.msra.mxu0 %v199_v2  ;;  %p255_p5 = por %p254_p4, %p253_p3 }
  0x2d   :  { %179 = vmatprep.subr.bf16.mxu0 %v280_v0 }
  0x2e   :  { %p256_p6 = pnand %p255_p5, %p249_p2 }
  0x30   :  { %180 = vmatpush3.bf16.msra.mxu0 %v200_v3 }
  0x31   :  { %181 = vmatprep.subr.bf16.mxu0 %v280_v0 }
  0x34   :  { %182 = vmatpush3.bf16.msra.mxu0 %v201_v4 }
  0x35   :  { %183 = vmatprep.subr.bf16.mxu0 %v280_v0 }
  0x38   :  { %184 = vmatpush3.bf16.msra.mxu0 %v202_v5 }
  0x39   :  { %185 = vmatprep.subr.bf16.mxu0 %v280_v0 }
  0x3c   :  { %186 = vmatpush3.bf16.msra.mxu0 %v203_v6 }
  0x3f   :  { %188 = vmatmul.mubr.msk.bf16.vlgmr.msra.gmra.mrb[0].mxu0 %vm99_vm1, %v43_v8 }
 0x112   :  { %v137_v10 = vpop.f32.mrb[0].mxu0 }
 0x113   :  { %v138_v11 = vadd.f32 %v160_v9, %v137_v10  ;;  %v189_v12 = vpop.f32.mrb[1].mxu0 }
 0x114   :  { %v140_v13 = vpop.f32.mrb[2].mxu0 }
 0x115   :  { %143 = vst [vmem:[#allocation7] sm:$0x3] %v138_v11  ;;  %v190_v14 = vpop.f32.mrb[3].mxu0 }
 0x116   :  { %259 = shalt.err (!%p256_p6)
}
 0x117   :  { %s260_s2 = scalar_lea.hbm %s352_s3, 32 }
 0x118   :  { %p261_p7 = scmp.ne.s32.totalorder %s352_s3, %s260_s2  ;;  %p264_p8 = scmp.lt.u32.totalorder %s260_s2, %s352_s3 }
 0x11a   :  { %p266_p9 = pnand %p264_p8, %p261_p7 }
 0x11c   :  { %269 = shalt.err (!%p266_p9)
}
 0x11d   :  { %153 = dma.vmem_to_hbm [thread:$0]  %s151_s12, 32, %s352_s3, [#allocation4]  }
 0x11e   :  { %274 = dma.done.wait [#allocation4], 32  }
 0x11f   :  { %275 = vsyncadd [#allocation4], 4294967264 }
 0x120   :  { %157 = vsyncpa [#allocation3], 1 }
 0x121   :  { %158 = vsyncpa [#allocation6], 1 }
 0x122   :  { %159 = vsyncpa [#allocation4], 1 }

</bundles_post_ra>
